<compile_context>
chip_gen: v7x
topology: tpu7x:2x2x1
jax: 0.10.0
libtpu: 0.0.40
codegen_flags: <defaults>
</compile_context>

<pallas_src>
import functools
import numpy as np
import jax
import jax.numpy as jnp
from jax import lax
from jax.experimental import pallas as pl
from jax.experimental.pallas import tpu as pltpu

VMEM = pltpu.MemorySpace.VMEM
F32 = jnp.float32
BF16 = jnp.bfloat16


def _default_vmem_limit():
    try:
        cap = pltpu.get_tpu_info().vmem_capacity_bytes
    except Exception:
        cap = 64 * 1024 * 1024
    # leave headroom; this is a cap, not a requirement (48 MiB on v7x, ~96-100 MiB v5e/v6e)
    return int(min(100 * 1024 * 1024, (cap * 3) // 4))


_VMEM_LIMIT = _default_vmem_limit()


def _round_up(n, m):
    return ((n + m - 1) // m) * m


def _pad_rows(n):
    p = _round_up(max(int(n), 1), 128)
    if p >= 1024:
        p = _round_up(p, 512)
    return p


def _row_tile(rows):
    for t in (512, 256, 128):
        if rows % t == 0:
            return t
    return rows


def _layernorm(x, gamma, beta, eps=1e-5):
    mu = jnp.mean(x, axis=-1, keepdims=True)
    var = jnp.mean((x - mu) ** 2, axis=-1, keepdims=True)
    return (x - mu) * lax.rsqrt(var + eps) * gamma + beta


def _silu(x):
    return x * jax.nn.sigmoid(x)


def _full(shape):
    return pl.BlockSpec(shape, lambda i: (0, 0))


def _pipeline_kwargs(depth):
    """pipeline_mode=pl.Buffered(depth) when supported; silently fall back otherwise."""
    if depth <= 2:
        return {}
    try:
        pl.BlockSpec((8, 128), lambda i: (i, 0), pipeline_mode=pl.Buffered(depth))
        return dict(pipeline_mode=pl.Buffered(depth))
    except Exception:
        return {}


def _choose_edge_tiling(e_pad, n_pad, h, budget):
    """VMEM-budget-aware (edge_tile, buffer_depth, core_split) for the edge sweep."""
    def streamed_bytes(te):
        # y in + yo out (f32) + cutoff column (lane-padded) + a_src/a_dst (bf16)
        return te * (2 * h * 4 + 128 * 4 + 2 * n_pad * 2)

    resident = (n_pad * 3 * h * 2      # nlin (bf16), resident
                + n_pad * 2 * h * 4    # per-core partial accumulator (f32)
                + h * h * 2            # edge_gate weight (bf16)
                + 8 * h * 4)           # biases / LN params
    te = 128
    for cand in (1024, 512, 256, 128):
        if e_pad % cand == 0 and resident + 2 * streamed_bytes(cand) <= int(0.8 * budget):
            te = cand
            break
    n_tiles = e_pad // te
    depth = 3 if (n_tiles >= 6
                  and resident + 3 * streamed_bytes(te) <= int(0.7 * budget)) else 2
    cores = 2 if (n_tiles >= 2 and n_tiles % 2 == 0) else 1
    return te, depth, cores


# ----------------------------- Pallas kernels --------------------------------

def _mlp_kernel(x_ref, w_ref, b_ref, g_ref, bt_ref, o_ref):
    """MLPLayer: Linear -> LayerNorm -> SiLU (row-tiled, bf16 MXU operands)."""
    h = jnp.dot(x_ref[...].astype(BF16), w_ref[...],
                preferred_element_type=F32) + b_ref[...]
    o_ref[...] = _silu(_layernorm(h, g_ref[...], bt_ref[...]))


def mlp_layer(x, params):
    rows, fin = x.shape
    w, b, g, bt = params
    fout = w.shape[1]
    rt = _row_tile(rows)
    return pl.pallas_call(
        _mlp_kernel,
        out_shape=jax.ShapeDtypeStruct((rows, fout), F32),
        grid=(rows // rt,),
        in_specs=[pl.BlockSpec((rt, fin), lambda i: (i, 0)),
                  _full((fin, fout)), _full((1, fout)),
                  _full((1, fout)), _full((1, fout))],
        out_specs=pl.BlockSpec((rt, fout), lambda i: (i, 0)),
        compiler_params=pltpu.CompilerParams(
            dimension_semantics=("parallel",), vmem_limit_bytes=_VMEM_LIMIT),
    )(x, w, b, g, bt)


def _rbf_embed_kernel(d_ref, c_ref, w1_ref, b1_ref, g1_ref, bt1_ref,
                      w2_ref, b2_ref, g2_ref, bt2_ref, o_ref, *, gamma):
    """Fused RBFExpansion -> MLPLayer -> MLPLayer (edge / angle embedding)."""
    rbf = jnp.exp(-gamma * (d_ref[...] - c_ref[...]) ** 2)
    h1 = jnp.dot(rbf.astype(BF16), w1_ref[...], preferred_element_type=F32) + b1_ref[...]
    h1 = _silu(_layernorm(h1, g1_ref[...], bt1_ref[...]))
    h2 = jnp.dot(h1.astype(BF16), w2_ref[...], preferred_element_type=F32) + b2_ref[...]
    o_ref[...] = _silu(_layernorm(h2, g2_ref[...], bt2_ref[...]))


def rbf_embed(d, vmin, vmax, bins, p1, p2):
    rows = d.shape[0]
    rt = _row_tile(rows)
    w1, b1, g1, bt1 = p1
    w2, b2, g2, bt2 = p2
    emb, out = w1.shape[1], w2.shape[1]
    centers = jnp.linspace(vmin, vmax, bins, dtype=F32).reshape(1, bins)
    gamma = float(bins - 1) / float(vmax - vmin)   # 1 / mean bin spacing (ALIGNN)
    return pl.pallas_call(
        functools.partial(_rbf_embed_kernel, gamma=gamma),
        out_shape=jax.ShapeDtypeStruct((rows, out), F32),
        grid=(rows // rt,),
        in_specs=[pl.BlockSpec((rt, 1), lambda i: (i, 0)),
                  _full((1, bins)),
                  _full((bins, emb)), _full((1, emb)), _full((1, emb)), _full((1, emb)),
                  _full((emb, out)), _full((1, out)), _full((1, out)), _full((1, out))],
        out_specs=pl.BlockSpec((rt, out), lambda i: (i, 0)),
        compiler_params=pltpu.CompilerParams(
            dimension_semantics=("parallel",), vmem_limit_bytes=_VMEM_LIMIT),
    )(d, centers, w1, b1, g1, bt1, w2, b2, g2, bt2)


# --- EdgeGatedGraphConv, split into pre-linear / edge sweep / finalize ---------

def _egc_node_prelinear_kernel(x_ref, wn_ref, bn_ref, nlin_ref, sx_ref, *, hidden):
    """Fused node linears (src_gate | dst_update | dst_gate | src_update) = one [H,4H]."""
    h = hidden
    nl = (jnp.dot(x_ref[...].astype(BF16), wn_ref[...], preferred_element_type=F32)
          + bn_ref[...])
    nlin_ref[...] = nl[:, : 3 * h].astype(BF16)   # e_src | Bh | e_dst (gathered side)
    sx_ref[...] = nl[:, 3 * h:]                   # src_update, kept f32 for finalize


def egc_node_prelinear(x, p):
    n_pad, h = x.shape
    rt = _row_tile(n_pad)
    return pl.pallas_call(
        functools.partial(_egc_node_prelinear_kernel, hidden=h),
        out_shape=(jax.ShapeDtypeStruct((n_pad, 3 * h), BF16),
                   jax.ShapeDtypeStruct((n_pad, h), F32)),
        grid=(n_pad // rt,),
        in_specs=[pl.BlockSpec((rt, h), lambda i: (i, 0)),
                  _full((h, 4 * h)), _full((1, 4 * h))],
        out_specs=(pl.BlockSpec((rt, 3 * h), lambda i: (i, 0)),
                   pl.BlockSpec((rt, h), lambda i: (i, 0))),
        compiler_params=pltpu.CompilerParams(
            dimension_semantics=("parallel",), vmem_limit_bytes=_VMEM_LIMIT),
    )(x, p["w_nodes"], p["b_nodes"])


def _egc_edge_kernel(y_ref, cut_ref, asrc_ref, adst_ref, nlin_ref,
                     weg_ref, beg_ref, ge_ref, geb_ref,
                     yo_ref, acc_ref, *, hidden, skip_edgenorm):
    """Edge sweep: gather, gate, edge update, and 2H-wide scatter-sum accumulation.

    Grid is (cores, edge_tiles): leading 'parallel' axis shards edge tiles across
    TensorCores (v7x); each core owns its own (n_pad, 2H) partial accumulator block.
    """
    h = hidden
    t = pl.program_id(1)

    @pl.when(t == 0)
    def _init():
        acc_ref[...] = jnp.zeros_like(acc_ref)

    asrc = asrc_ref[...]
    adst = adst_ref[...]

    # one gather matmul for (e_src | Bh) from source nodes, one for e_dst
    gsrc = jnp.dot(asrc, nlin_ref[:, : 2 * h], preferred_element_type=F32)
    e_dst = jnp.dot(adst, nlin_ref[:, 2 * h:], preferred_element_type=F32)

    # m_ij = A x_i + B x_j + C y_ij
    m = (gsrc[:, :h] + e_dst
         + jnp.dot(y_ref[...].astype(BF16), weg_ref[...], preferred_element_type=F32)
         + beg_ref[...])
    sigma = jax.nn.sigmoid(m) * cut_ref[...]          # cutoff-smoothed edge gate
    msg = sigma * gsrc[:, h:]                         # u_mul_e (Bh gathered from source)

    # single 2H-wide scatter-sum to destination nodes: adst^T @ (msg | sigma)
    packed = jnp.concatenate([msg, sigma], axis=1).astype(BF16)
    dn = (((0,), (0,)), ((), ()))
    acc_ref[...] += lax.dot_general(adst, packed, dn, preferred_element_type=F32)

    if skip_edgenorm:
        yo_ref[...] = y_ref[...] + m
    else:
        yo_ref[...] = y_ref[...] + _silu(_layernorm(m, ge_ref[...], geb_ref[...]))


def egc_edge_sweep(y, cutoff, a_src, a_dst, nlin, p, skip_edgenorm):
    e_pad, h = y.shape
    n_pad = nlin.shape[0]
    te, depth, cores = _choose_edge_tiling(e_pad, n_pad, h, _VMEM_LIMIT)
    n_tiles = e_pad // te
    tpc = n_tiles // cores
    buf = _pipeline_kwargs(depth)

    emap = lambda c, t: (c * tpc + t, 0)
    full2 = lambda shape: pl.BlockSpec(shape, lambda c, t: (0, 0))

    yo, acc = pl.pallas_call(
        functools.partial(_egc_edge_kernel, hidden=h, skip_edgenorm=skip_edgenorm),
        out_shape=(jax.ShapeDtypeStruct((e_pad, h), F32),
                   jax.ShapeDtypeStruct((cores, n_pad, 2 * h), F32)),
        grid=(cores, tpc),
        in_specs=[
            pl.BlockSpec((te, h), emap, **buf),          # y tile
            pl.BlockSpec((te, 1), emap),                 # cutoff tile
            pl.BlockSpec((te, n_pad), emap, **buf),      # src one-hot (bf16)
            pl.BlockSpec((te, n_pad), emap, **buf),      # dst one-hot (bf16)
            full2((n_pad, 3 * h)),                       # nlin (resident, bf16)
            full2((h, h)), full2((1, h)),                # edge_gate
            full2((1, h)), full2((1, h)),                # LN edges
        ],
        out_specs=(pl.BlockSpec((te, h), emap),
                   pl.BlockSpec((None, n_pad, 2 * h), lambda c, t: (c, 0, 0))),
        compiler_params=pltpu.CompilerParams(
            dimension_semantics=("parallel", "arbitrary"),
            vmem_limit_bytes=_VMEM_LIMIT),
    )(y, cutoff, a_src, a_dst, nlin, *p["edge_gate"], *p["ln_edges"])
    return yo, acc


def _egc_node_finalize_kernel(x_ref, sx_ref, acc_ref, mask_ref, g_ref, b_ref,
                              xo_ref, *, hidden):
    """Reduce per-core partial sums, normalize, and apply the masked residual update."""
    h = hidden
    acc = jnp.sum(acc_ref[...], axis=0)                      # (rt, 2h)
    hmsg = acc[:, :h] * pl.reciprocal(acc[:, h:] + 1e-6, approx=True)
    xo_ref[...] = x_ref[...] + mask_ref[...] * _silu(
        _layernorm(sx_ref[...] + hmsg, g_ref[...], b_ref[...]))


def egc_node_finalize(x, sx, acc, node_mask, p):
    n_pad, h = x.shape
    cores = acc.shape[0]
    rt = _row_tile(n_pad)
    return pl.pallas_call(
        functools.partial(_egc_node_finalize_kernel, hidden=h),
        out_shape=jax.ShapeDtypeStruct((n_pad, h), F32),
        grid=(n_pad // rt,),
        in_specs=[pl.BlockSpec((rt, h), lambda i: (i, 0)),
                  pl.BlockSpec((rt, h), lambda i: (i, 0)),
                  pl.BlockSpec((cores, rt, 2 * h), lambda i: (0, i, 0)),
                  pl.BlockSpec((rt, 1), lambda i: (i, 0)),
                  _full((1, h)), _full((1, h))],
        out_specs=pl.BlockSpec((rt, h), lambda i: (i, 0)),
        compiler_params=pltpu.CompilerParams(
            dimension_semantics=("parallel",), vmem_limit_bytes=_VMEM_LIMIT),
    )(x, sx, acc, node_mask, *p["ln_nodes"])


def edge_gated_conv(x, y, cutoff, a_src, a_dst, node_mask, p, skip_edgenorm):
    nlin, sx = egc_node_prelinear(x, p)
    yo, acc = egc_edge_sweep(y, cutoff, a_src, a_dst, nlin, p, skip_edgenorm)
    xo = egc_node_finalize(x, sx, acc, node_mask, p)
    return xo, yo


def _readout_kernel(x_ref, w_ref, b_ref, o_ref, *, inv_scale, n_rows):
    """AvgPooling/SumPooling(fc(x)): reduce over atoms first, then one tiny dot."""
    xsum = jnp.sum(x_ref[...], axis=0, keepdims=True)
    o_ref[...] = (jnp.dot(xsum, w_ref[...], preferred_element_type=F32) * inv_scale
                  + b_ref[...] * (n_rows * inv_scale))


def readout_energy(x, w, b, avg=True):
    n = x.shape[0]
    inv = (1.0 / n) if avg else 1.0
    return pl.pallas_call(
        functools.partial(_readout_kernel, inv_scale=float(inv), n_rows=float(n)),
        out_shape=jax.ShapeDtypeStruct((1, w.shape[1]), F32),
        in_specs=[pl.BlockSpec(memory_space=VMEM)] * 3,
        out_specs=pl.BlockSpec(memory_space=VMEM),
        compiler_params=pltpu.CompilerParams(vmem_limit_bytes=_VMEM_LIMIT),
    )(x, w, b)


# ----------------------------- parameters ------------------------------------

def linear_params(key, fan_in, fan_out, dtype=BF16):
    kw, kb = jax.random.split(key)
    bound = 1.0 / float(np.sqrt(fan_in))
    w = jax.random.uniform(kw, (fan_in, fan_out), F32, -bound, bound).astype(dtype)
    b = jax.random.uniform(kb, (1, fan_out), F32, -bound, bound)
    return (w, b)


def mlp_params(key, fan_in, fan_out):
    w, b = linear_params(key, fan_in, fan_out)
    return (w, b, jnp.ones((1, fan_out), F32), jnp.zeros((1, fan_out), F32))


def egc_params(key, h):
    ks = jax.random.split(key, 5)
    sg = linear_params(ks[0], h, h)   # src_gate
    du = linear_params(ks[1], h, h)   # dst_update (Bh)
    dg = linear_params(ks[2], h, h)   # dst_gate
    su = linear_params(ks[3], h, h)   # src_update
    eg = linear_params(ks[4], h, h)   # edge_gate
    return dict(
        w_nodes=jnp.concatenate([sg[0], du[0], dg[0], su[0]], axis=1),   # [h, 4h] bf16
        b_nodes=jnp.concatenate([sg[1], du[1], dg[1], su[1]], axis=1),   # [1, 4h] f32
        edge_gate=eg,
        ln_nodes=(jnp.ones((1, h), F32), jnp.zeros((1, h), F32)),
        ln_edges=(jnp.ones((1, h), F32), jnp.zeros((1, h), F32)),
    )


class Config:
    alignn_layers = 2            # scaled down from 4 for the small demo
    gcn_layers = 2               # scaled down from 4
    atom_feat_dim = 92           # CGCNN attribute embedding dim (zero-padded to 128)
    edge_input_features = 32     # RBF bins for bond lengths (scaled from 80)
    triplet_input_features = 16  # RBF bins for bond cosines (scaled from 40)
    embedding_features = 64
    hidden_features = 128        # scaled from 256; lane-dense (multiple of 128)
    output_features = 1
    local_cutoff = 6.0
    cutoff_onset = 7.5
    cutoff_radius = 8.0
    energy_units = "eV/atom"


def init_params(key, cfg):
    keys = jax.random.split(key, 32)
    it = iter(keys)
    params = {}
    # TODO(synk): deterministic synthetic stand-in for the CGCNN attribute lookup table.
    feat_pad = _round_up(cfg.atom_feat_dim, 128)
    table = jax.random.normal(next(it), (108, cfg.atom_feat_dim), F32)
    params["cgcnn_table"] = jnp.pad(table, ((0, 0), (0, feat_pad - cfg.atom_feat_dim)))
    params["atom_mlp"] = mlp_params(next(it), feat_pad, cfg.hidden_features)
    params["edge_mlp1"] = mlp_params(next(it), cfg.edge_input_features, cfg.embedding_features)
    params["edge_mlp2"] = mlp_params(next(it), cfg.embedding_features, cfg.hidden_features)
    params["angle_mlp1"] = mlp_params(next(it), cfg.triplet_input_features, cfg.embedding_features)
    params["angle_mlp2"] = mlp_params(next(it), cfg.embedding_features, cfg.hidden_features)
    params["alignn"] = []
    for idx in range(1, cfg.alignn_layers + 1):
        params["alignn"].append(dict(
            node=egc_params(next(it), cfg.hidden_features),
            edge=egc_params(next(it), cfg.hidden_features),
            skip_last_norm=(idx == cfg.alignn_layers)))
    params["gcn"] = []
    for idx in range(1, cfg.gcn_layers + 1):
        params["gcn"].append((egc_params(next(it), cfg.hidden_features),
                              idx == cfg.gcn_layers))
    params["fc"] = linear_params(next(it), cfg.hidden_features, cfg.output_features,
                                 dtype=F32)
    return params


# ----------------------------- graph glue (host) ------------------------------

def xplor_cutoff(r, r_on, r_cut):
    r2 = r * r
    on2 = r_on * r_on
    c2 = r_cut * r_cut
    s = ((c2 - r2) ** 2 * (c2 + 2.0 * r2 - 3.0 * on2)) / (c2 - on2) ** 3
    return np.where(r < r_on, 1.0, np.where(r < r_cut, s, 0.0)).astype(np.float32)


def build_radius_graph(positions, cutoff):
    # TODO(synk): non-periodic stand-in for PeriodicRadiusGraph(cutoff=8.0).
    n = positions.shape[0]
    src, dst = [], []
    for i in range(n):
        for j in range(n):
            if i != j and np.linalg.norm(positions[j] - positions[i]) <= cutoff:
                src.append(i)
                dst.append(j)
    src = np.array(src, np.int32)
    dst = np.array(dst, np.int32)
    r = (positions[dst] - positions[src]).astype(np.float32)
    return src, dst, r


def build_line_graph(src, dst, local_idx):
    # dgl.line_graph on the bondlength<=6 edge subgraph (backtracking included):
    # node a = local edge a, edge a->b iff dst(a) == src(b).  Indices are local
    # (into local_idx) here; prepare_graph maps them to global edge columns.
    s = src[local_idx]
    d = dst[local_idx]
    e_local = len(local_idx)
    lsrc, ldst = [], []
    for a in range(e_local):
        for b in range(e_local):
            if d[a] == s[b]:
                lsrc.append(a)
                ldst.append(b)
    return np.array(lsrc, np.int32), np.array(ldst, np.int32)


def prepare_graph(positions, atomic_number, cfg):
    n = positions.shape[0]
    src, dst, r = build_radius_graph(positions, cfg.cutoff_radius)
    bondlength = np.linalg.norm(r, axis=1)
    e = len(src)
    y_mask = np.where(bondlength <= cfg.local_cutoff)[0].astype(np.int32)
    lg_src, lg_dst = build_line_graph(src, dst, y_mask)

    r_local = r[y_mask]
    r1 = -r_local[lg_src]
    r2 = r_local[lg_dst]
    bond_cos = np.sum(r1 * r2, axis=1) / (
        np.linalg.norm(r1, axis=1) * np.linalg.norm(r2, axis=1))
    bond_cos = np.clip(bond_cos, -1.0, 1.0)

    n_pad = _pad_rows(n)
    e_pad = _pad_rows(e)
    elg = len(lg_src)
    elg_pad = _pad_rows(elg)

    def onehot(idx, rows_pad, cols_pad):
        a = np.zeros((rows_pad, cols_pad), np.float32)
        if len(idx):
            a[np.arange(len(idx)), idx] = 1.0
        return jnp.asarray(a, dtype=BF16)   # exact 0/1 in bf16, halves DMA/VMEM

    # line graph incidence over *global* edge columns (so its node side is y / m itself)
    lg_src_g = y_mask[lg_src] if elg else np.zeros((0,), np.int32)
    lg_dst_g = y_mask[lg_dst] if elg else np.zeros((0,), np.int32)

    z_pad = np.zeros(n_pad, np.int32)
    z_pad[:n] = atomic_number
    d_pad = np.zeros((e_pad, 1), np.float32)
    d_pad[:e, 0] = bondlength
    cut = np.zeros((e_pad, 1), np.float32)   # padded edges get cutoff 0 -> no contribution
    cut[:e, 0] = xplor_cutoff(bondlength, cfg.cutoff_onset, cfg.cutoff_radius)
    cos_pad = np.zeros((elg_pad, 1), np.float32)
    cos_pad[:elg, 0] = bond_cos
    lg_cut = np.zeros((elg_pad, 1), np.float32)
    lg_cut[:elg, 0] = 1.0                    # no cutoff on the line graph

    # 0/1 masks applied to the node-side residual update in the finalize kernel:
    # all atoms for g-convs; only local (<=6A) edges for the line-graph conv
    atom_mask = np.ones((n_pad, 1), np.float32)
    y_mask_col = np.zeros((e_pad, 1), np.float32)
    y_mask_col[y_mask, 0] = 1.0

    return dict(
        n_atoms=n, n_pad=n_pad, e=e, e_pad=e_pad, elg=elg, elg_pad=elg_pad,
        atomic_number=jnp.asarray(z_pad),
        bondlength=jnp.asarray(d_pad),
        cutoff_value=jnp.asarray(cut),
        bond_cosines=jnp.asarray(cos_pad),
        lg_cutoff=jnp.asarray(lg_cut),
        a_src=onehot(src, e_pad, n_pad),
        a_dst=onehot(dst, e_pad, n_pad),
        lg_a_src=onehot(lg_src_g, elg_pad, e_pad),
        lg_a_dst=onehot(lg_dst_g, elg_pad, e_pad),
        atom_mask=jnp.asarray(atom_mask),
        y_mask_col=jnp.asarray(y_mask_col),
    )


# ----------------------------- forward ----------------------------------------

def alignn_ff_forward(params, cfg, g):
    # atom embedding: CGCNN attribute lookup + MLPLayer
    atom_feats = jnp.take(params["cgcnn_table"], g["atomic_number"], axis=0)
    x = mlp_layer(atom_feats, params["atom_mlp"])

    # edge embedding: RBF(0, 8) -> MLPLayer -> MLPLayer (single fused kernel)
    y = rbf_embed(g["bondlength"], 0.0, 8.0, cfg.edge_input_features,
                  params["edge_mlp1"], params["edge_mlp2"])

    # angle embedding on line-graph edges: RBF(-1, 1) -> MLPLayer -> MLPLayer (fused)
    z = rbf_embed(g["bond_cosines"], -1.0, 1.0, cfg.triplet_input_features,
                  params["angle_mlp1"], params["angle_mlp2"])

    atom_mask = g["atom_mask"]
    y_mask_col = g["y_mask_col"]

    # alternating ALIGNN updates (SparseALIGNNConv).  The y_mask gather/scatter-back
    # of the reference is folded into the line-graph conv: its node set is the full
    # edge set and the 0/1 mask gates the residual update (y[y_mask] = y_update exactly).
    for layer in params["alignn"]:
        x, m = edge_gated_conv(x, y, g["cutoff_value"], g["a_src"], g["a_dst"],
                               atom_mask, layer["node"], skip_edgenorm=False)
        y, z = edge_gated_conv(m, z, g["lg_cutoff"], g["lg_a_src"], g["lg_a_dst"],
                               y_mask_col, layer["edge"],
                               skip_edgenorm=layer["skip_last_norm"])

    # GCN updates (EdgeGatedGraphConv)
    for p_gcn, skip in params["gcn"]:
        x, y = edge_gated_conv(x, y, g["cutoff_value"], g["a_src"], g["a_dst"],
                               atom_mask, p_gcn, skip_edgenorm=skip)

    # atomwise fc + AvgPooling (energy_units == 'eV/atom'), then squeeze
    w_fc, b_fc = params["fc"]
    x_real = x[: g["n_atoms"]]
    energy = readout_energy(x_real, w_fc, b_fc, avg=(cfg.energy_units == "eV/atom"))
    # TODO(synk): compute_forces / autograd_forces path not implemented (config default False).
    return jnp.squeeze(energy)


# ----------------------------- main --------------------------------------------

if __name__ == "__main__":
    cfg = Config()
    key = jax.random.PRNGKey(0)
    k_param, k_pos, k_z = jax.random.split(key, 3)

    n_atoms = 10
    positions = np.asarray(jax.random.uniform(k_pos, (n_atoms, 3), F32, 0.0, 6.0))
    atomic_number = np.asarray(jax.random.randint(k_z, (n_atoms,), 1, 95)).astype(np.int32)

    graph = prepare_graph(positions, atomic_number, cfg)
    assert graph["e"] > 0 and graph["elg"] > 0

    params = init_params(k_param, cfg)
    energy = alignn_ff_forward(params, cfg, graph)
    energy = jax.block_until_ready(energy)
    assert energy.shape == () and energy.dtype == jnp.float32
    assert bool(jnp.isfinite(energy))
    print("KERNEL_OK")
</pallas_src>

<mosaic_0001>
module attributes {stable_mosaic.version = 11 : i64} {
  func.func @_mlp_kernel(%arg0: i32, %arg1: memref<128x128xf32, #tpu.memory_space<vmem>>, %arg2: memref<128x128xbf16, #tpu.memory_space<vmem>>, %arg3: memref<1x128xf32, #tpu.memory_space<vmem>>, %arg4: memref<1x128xf32, #tpu.memory_space<vmem>>, %arg5: memref<1x128xf32, #tpu.memory_space<vmem>>, %arg6: memref<128x128xf32, #tpu.memory_space<vmem>>) attributes {dimension_semantics = [#tpu.dimension_semantics<parallel>], iteration_bounds = array<i64: 1>, scalar_prefetch = 0 : i64, scratch_operands = 0 : i64, tpu.core_type = #tpu.core_type<tc>, window_params = [{transform_indices = @transform_0, window_bounds = array<i64: 128, 128>}, {pipeline_mode = #tpu.pipeline_mode<synchronous>, transform_indices = @transform_1, window_bounds = array<i64: 128, 128>}, {pipeline_mode = #tpu.pipeline_mode<synchronous>, transform_indices = @transform_2, window_bounds = array<i64: 1, 128>}, {pipeline_mode = #tpu.pipeline_mode<synchronous>, transform_indices = @transform_3, window_bounds = array<i64: 1, 128>}, {pipeline_mode = #tpu.pipeline_mode<synchronous>, transform_indices = @transform_4, window_bounds = array<i64: 1, 128>}, {transform_indices = @transform_5, window_bounds = array<i64: 128, 128>}]} {
    %c0 = arith.constant 0 : index
    %c0_0 = arith.constant 0 : index
    %0 = vector.load %arg1[%c0, %c0_0] : memref<128x128xf32, #tpu.memory_space<vmem>>, vector<128x128xf32>
    %1 = arith.truncf %0 : vector<128x128xf32> to vector<128x128xbf16>
    %c0_1 = arith.constant 0 : index
    %c0_2 = arith.constant 0 : index
    %2 = vector.load %arg2[%c0_1, %c0_2] : memref<128x128xbf16, #tpu.memory_space<vmem>>, vector<128x128xbf16>
    %cst = arith.constant dense<0.000000e+00> : vector<128x128xf32>
    %3 = tpu.matmul %1, %2, %cst {dimension_numbers = #tpu.dot_dimension_numbers<[1], [0], [0], [1], [0, 0, 1, 1], [], []>} : vector<128x128xbf16>, vector<128x128xbf16>, vector<128x128xf32> -> vector<128x128xf32>
    %c0_3 = arith.constant 0 : index
    %c0_4 = arith.constant 0 : index
    %4 = vector.load %arg3[%c0_3, %c0_4] : memref<1x128xf32, #tpu.memory_space<vmem>>, vector<1x128xf32>
    %5 = vector.broadcast %4 : vector<1x128xf32> to vector<128x128xf32>
    %6 = arith.addf %3, %5 : vector<128x128xf32>
    %c0_5 = arith.constant 0 : index
    %c0_6 = arith.constant 0 : index
    %7 = vector.load %arg4[%c0_5, %c0_6] : memref<1x128xf32, #tpu.memory_space<vmem>>, vector<1x128xf32>
    %c0_7 = arith.constant 0 : index
    %c0_8 = arith.constant 0 : index
    %8 = vector.load %arg5[%c0_7, %c0_8] : memref<1x128xf32, #tpu.memory_space<vmem>>, vector<1x128xf32>
    %cst_9 = arith.constant dense<0.000000e+00> : vector<128xf32>
    %9 = vector.multi_reduction <add>, %6, %cst_9 [1] : vector<128x128xf32> to vector<128xf32>
    %10 = vector.shape_cast %9 : vector<128xf32> to vector<128x1xf32>
    %cst_10 = arith.constant 1.280000e+02 : f32
    %11 = vector.broadcast %cst_10 : f32 to vector<128x1xf32>
    %12 = arith.divf %10, %11 : vector<128x1xf32>
    %13 = vector.broadcast %12 : vector<128x1xf32> to vector<128x128xf32>
    %14 = arith.subf %6, %13 : vector<128x128xf32>
    %15 = arith.mulf %14, %14 : vector<128x128xf32>
    %cst_11 = arith.constant dense<0.000000e+00> : vector<128xf32>
    %16 = vector.multi_reduction <add>, %15, %cst_11 [1] : vector<128x128xf32> to vector<128xf32>
    %17 = vector.shape_cast %16 : vector<128xf32> to vector<128x1xf32>
    %cst_12 = arith.constant 1.280000e+02 : f32
    %18 = vector.broadcast %cst_12 : f32 to vector<128x1xf32>
    %19 = arith.divf %17, %18 : vector<128x1xf32>
    %20 = vector.broadcast %12 : vector<128x1xf32> to vector<128x128xf32>
    %21 = arith.subf %6, %20 : vector<128x128xf32>
    %cst_13 = arith.constant 9.99999974E-6 : f32
    %22 = vector.broadcast %cst_13 : f32 to vector<128x1xf32>
    %23 = arith.addf %19, %22 : vector<128x1xf32>
    %24 = math.rsqrt %23 : vector<128x1xf32>
    %25 = vector.broadcast %24 : vector<128x1xf32> to vector<128x128xf32>
    %26 = arith.mulf %21, %25 : vector<128x128xf32>
    %27 = vector.broadcast %7 : vector<1x128xf32> to vector<128x128xf32>
    %28 = arith.mulf %26, %27 : vector<128x128xf32>
    %29 = vector.broadcast %8 : vector<1x128xf32> to vector<128x128xf32>
    %30 = arith.addf %28, %29 : vector<128x128xf32>
    %31 = arith.negf %30 : vector<128x128xf32>
    %32 = math.exp %31 : vector<128x128xf32>
    %cst_14 = arith.constant 1.000000e+00 : f32
    %33 = vector.broadcast %cst_14 : f32 to vector<128x128xf32>
    %34 = arith.addf %33, %32 : vector<128x128xf32>
    %35 = arith.divf %33, %34 : vector<128x128xf32>
    %36 = arith.mulf %30, %35 : vector<128x128xf32>
    %c0_15 = arith.constant 0 : index
    %c0_16 = arith.constant 0 : index
    %37 = vector.load %arg6[%c0_15, %c0_16] : memref<128x128xf32, #tpu.memory_space<vmem>>, vector<128x128xf32>
    tpu.vector_store %arg6[%c0_15, %c0_16], %36 {strides = array<i32>} : memref<128x128xf32, #tpu.memory_space<vmem>>, vector<128x128xf32>,
    return
  }
  func.func @transform_0(%arg0: i32) -> (i32, i32) {
    %c0_i32 = arith.constant 0 : i32
    %c0_i32_0 = arith.constant 0 : i32
    return %arg0, %c0_i32 : i32, i32
  }
  func.func @transform_1(%arg0: i32) -> (i32, i32) {
    %c0_i32 = arith.constant 0 : i32
    %c0_i32_0 = arith.constant 0 : i32
    %c0_i32_1 = arith.constant 0 : i32
    return %c0_i32, %c0_i32_0 : i32, i32
  }
  func.func @transform_2(%arg0: i32) -> (i32, i32) {
    %c0_i32 = arith.constant 0 : i32
    %c0_i32_0 = arith.constant 0 : i32
    %c0_i32_1 = arith.constant 0 : i32
    return %c0_i32, %c0_i32_0 : i32, i32
  }
  func.func @transform_3(%arg0: i32) -> (i32, i32) {
    %c0_i32 = arith.constant 0 : i32
    %c0_i32_0 = arith.constant 0 : i32
    %c0_i32_1 = arith.constant 0 : i32
    return %c0_i32, %c0_i32_0 : i32, i32
  }
  func.func @transform_4(%arg0: i32) -> (i32, i32) {
    %c0_i32 = arith.constant 0 : i32
    %c0_i32_0 = arith.constant 0 : i32
    %c0_i32_1 = arith.constant 0 : i32
    return %c0_i32, %c0_i32_0 : i32, i32
  }
  func.func @transform_5(%arg0: i32) -> (i32, i32) {
    %c0_i32 = arith.constant 0 : i32
    %c0_i32_0 = arith.constant 0 : i32
    return %arg0, %c0_i32 : i32, i32
  }
}

</mosaic_0001>

<bundles_post_ra>
// kernel: tpu_custom_call.1
= control target key start
LH: loop header
LB: loop body
LE: loop exit
PB: predicated region body
PF: predicated region fallthrough
CT: control target
= control target key end

     0   :  { %10 = vsyncpa [#allocation3], 0  ;;  %s1173_s0 = inlined_call_operand.hbm [shape: f32[128,128], index: 0, kind: input, shape index: {}]   ;;  %s1174_s1 = inlined_call_operand.hbm [shape: bf16[128,128], index: 1, kind: input, shape index: {}]   ;;  %s1175_s2 = inlined_call_operand.vmem [shape: f32[1,128], index: 2, kind: input, shape index: {}]   ;;  %s1176_s3 = inlined_call_operand.vmem [shape: f32[1,128], index: 3, kind: input, shape index: {}]   ;;  %s1177_s4 = inlined_call_operand.vmem [shape: f32[1,128], index: 4, kind: input, shape index: {}]   ;;  %s1178_s5 = inlined_call_operand.hbm [shape: f32[128,128], index: 5, kind: output, shape index: {}]  }
   0x1   :  { %11 = vsyncpa [#allocation6], 0 }
   0x2   :  { %12 = vsyncpa [#allocation4], 0  ;;  %s885_s18 = smov [#allocation2]   ;;  %s813_s22 = scalar_lea.hbm %s1173_s0, 2048 }
   0x3   :  { %s18_s19 = sshll.u32 %s885_s18, 4  ;;  %p814_p0 = scmp.ne.s32.totalorder %s1173_s0, %s813_s22  ;;  %s19_s19 = int_to_ptr.vmem [resolvable:$true] %s18_s19 }
   0x4   :  { %p817_p1 = scmp.lt.u32.totalorder %s813_s22, %s1173_s0 }
   0x6   :  { %p819_p2 = pnand %p817_p1, %p814_p0 }
   0x8   :  { %822 = shalt.err (!%p819_p2)
}
   0x9   :  { %s823_s27 = scalar_lea.vmem %s19_s19, 2048  ;;  %p828_p4 = scmp.lt.s32.totalorder %s19_s19, %s19_s19 }
   0xa   :  { %p824_p3 = scmp.ne.s32.totalorder %s19_s19, %s823_s27  ;;  %p829_p5 = scmp.lt.s32.totalorder %s823_s27, %s823_s27 }
   0xc   :  { %p830_p6 = por %p829_p5, %p828_p4 }
   0xe   :  { %p831_p7 = pnand %p830_p6, %p824_p3 }
  0x10   :  { %834 = shalt.err (!%p831_p7)
}
  0x11   :  { %s886_s28 = smov 128   ;;  %s887_s29 = smov 8  }
  0x12   :  { %24 = dma.hbm_to_vmem [thread:$0]  %s1173_s0, 2048, %s19_s19, [#allocation3], %s886_s28, %s886_s28, %s887_s29  }
  0x13   :  { %s888_s7 = smov [#allocation5]   ;;  %s835_s11 = scalar_lea.hbm %s1174_s1, 1024 }
  0x14   :  { %s30_s8 = sshll.u32 %s888_s7, 4  ;;  %p836_p8 = scmp.ne.s32.totalorder %s1174_s1, %s835_s11  ;;  %s31_s8 = int_to_ptr.vmem [resolvable:$true] %s30_s8 }
  0x15   :  { %p839_p9 = scmp.lt.u32.totalorder %s835_s11, %s1174_s1 }
  0x17   :  { %p841_p10 = pnand %p839_p9, %p836_p8 }
  0x19   :  { %844 = shalt.err (!%p841_p10)
}
  0x1a   :  { %s845_s16 = scalar_lea.vmem %s31_s8, 1024  ;;  %p850_p12 = scmp.lt.s32.totalorder %s31_s8, %s31_s8 }
  0x1b   :  { %p846_p11 = scmp.ne.s32.totalorder %s31_s8, %s845_s16  ;;  %p851_p13 = scmp.lt.s32.totalorder %s845_s16, %s845_s16 }
  0x1d   :  { %p852_p0 = por %p851_p13, %p850_p12 }
  0x1f   :  { %p853_p1 = pnand %p852_p0, %p846_p11 }
  0x21   :  { %856 = shalt.err (!%p853_p1)
}
  0x22   :  { %s889_s0 = smov 64   ;;  %s890_s17 = smov 4  }
  0x23   :  { %36 = dma.hbm_to_vmem [thread:$0]  %s1174_s1, 1024, %s31_s8, [#allocation6], %s889_s0, %s889_s0, %s890_s17  }
  0x24   :  { %879 = dma.done.wait [#allocation3], 2048  }
  0x25   :  { %880 = vsyncadd [#allocation3], 4294965248 }
  0x26   :  { %881 = dma.done.wait [#allocation6], 1024  }
  0x27   :  { %882 = vsyncadd [#allocation6], 4294966272  ;;  %v709_v0 = vld [vmem:[#allocation5] sm:$0xff]   ;;  %v710_v1 = vld [vmem:[#allocation5 + $0x8] sm:$0xff]  }
  0x28   :  { %654 = vmatprep.subr.bf16.mxu0 %v709_v0  ;;  %686 = vmatprep.subr.bf16.mxu1 %v709_v0  ;;  %v711_v2 = vld [vmem:[#allocation5 + $0x10] sm:$0xff]   ;;  %v712_v3 = vld [vmem:[#allocation5 + $0x18] sm:$0xff]   ;;  %v50_v4 = vld [vmem:[#allocation2] sm:$0xff] }
  0x29   :  { %655 = vmatpush3.bf16.msra.mxu0 %v709_v0  ;;  %694 = vmatpush3.bf16.msra.mxu1 %v709_v0  ;;  %v51_v5 = vld [vmem:[#allocation2 + $0x8] sm:$0xff]  ;;  %v58_v6 = vld [vmem:[#allocation2 + $0x40] sm:$0xff]  ;;  %v715_v12 = vld [vmem:[#allocation5 + $0x30] sm:$0xff]  }
  0x2a   :  { %656 = vmatprep.subr.bf16.mxu0 %v710_v1  ;;  %687 = vmatprep.subr.bf16.mxu1 %v710_v1  ;;  %v66_v7 = vpack.c.bf16 %v51_v5, %v50_v4  ;;  %v59_v8 = vld [vmem:[#allocation2 + $0x48] sm:$0xff]  ;;  %v713_v10 = vld [vmem:[#allocation5 + $0x20] sm:$0xff]   ;;  %v716_v13 = vld [vmem:[#allocation5 + $0x38] sm:$0xff]  }
  0x2b   :  { %v70_v9 = vpack.c.bf16 %v59_v8, %v58_v6  ;;  %v714_v11 = vld [vmem:[#allocation5 + $0x28] sm:$0xff]   ;;  %v52_v14 = vld [vmem:[#allocation2 + $0x10] sm:$0xff]  ;;  %v53_v15 = vld [vmem:[#allocation2 + $0x18] sm:$0xff] }
  0x2c   :  { %670 = vmatprep.mubr.bf16.mxu0 %v66_v7  ;;  %v60_v16 = vld [vmem:[#allocation2 + $0x50] sm:$0xff]  ;;  %v61_v17 = vld [vmem:[#allocation2 + $0x58] sm:$0xff]  ;;  %v54_v18 = vld [vmem:[#allocation2 + $0x20] sm:$0xff]  ;;  %v67_v22 = vpack.c.bf16 %v53_v15, %v52_v14 }
  0x2d   :  { %657 = vmatpush3.bf16.msra.mxu0 %v710_v1  ;;  %695 = vmatpush3.bf16.msra.mxu1 %v710_v1  ;;  %v55_v19 = vld [vmem:[#allocation2 + $0x28] sm:$0xff]  ;;  %v62_v20 = vld [vmem:[#allocation2 + $0x60] sm:$0xff]  ;;  %v71_v23 = vpack.c.bf16 %v61_v17, %v60_v16  ;;  %v56_v26 = vld [vmem:[#allocation2 + $0x30] sm:$0xff] }
  0x2e   :  { %658 = vmatprep.subr.bf16.mxu0 %v711_v2  ;;  %688 = vmatprep.subr.bf16.mxu1 %v711_v2  ;;  %v63_v21 = vld [vmem:[#allocation2 + $0x68] sm:$0xff]  ;;  %v68_v24 = vpack.c.bf16 %v55_v19, %v54_v18  ;;  %v57_v27 = vld [vmem:[#allocation2 + $0x38] sm:$0xff]  ;;  %v64_v28 = vld [vmem:[#allocation2 + $0x70] sm:$0xff] }
  0x2f   :  { %678 = vmatprep.mubr.bf16.mxu1 %v70_v9  ;;  %v72_v25 = vpack.c.bf16 %v63_v21, %v62_v20  ;;  %v65_v29 = vld [vmem:[#allocation2 + $0x78] sm:$0xff]  ;;  %v69_v30 = vpack.c.bf16 %v57_v27, %v56_v26  ;;  %v611_v32 = vld [vmem:[%s1175_s2] ss:$0 sm:$0xff] }
  0x30   :  { %v73_v31 = vpack.c.bf16 %v65_v29, %v64_v28 }
  0x31   :  { %659 = vmatpush3.bf16.msra.mxu0 %v711_v2  ;;  %696 = vmatpush3.bf16.msra.mxu1 %v711_v2 }
  0x32   :  { %660 = vmatprep.subr.bf16.mxu0 %v712_v3  ;;  %689 = vmatprep.subr.bf16.mxu1 %v712_v3 }
  0x35   :  { %661 = vmatpush3.bf16.msra.mxu0 %v712_v3  ;;  %697 = vmatpush3.bf16.msra.mxu1 %v712_v3 }
  0x36   :  { %662 = vmatprep.subr.bf16.mxu0 %v713_v10  ;;  %690 = vmatprep.subr.bf16.mxu1 %v713_v10 }
  0x39   :  { %663 = vmatpush3.bf16.msra.mxu0 %v713_v10  ;;  %698 = vmatpush3.bf16.msra.mxu1 %v713_v10 }
  0x3a   :  { %664 = vmatprep.subr.bf16.mxu0 %v714_v11  ;;  %691 = vmatprep.subr.bf16.mxu1 %v714_v11 }
  0x3d   :  { %665 = vmatpush3.bf16.msra.mxu0 %v714_v11  ;;  %699 = vmatpush3.bf16.msra.mxu1 %v714_v11 }
  0x3e   :  { %666 = vmatprep.subr.bf16.mxu0 %v715_v12  ;;  %692 = vmatprep.subr.bf16.mxu1 %v715_v12 }
  0x41   :  { %667 = vmatpush3.bf16.msra.mxu0 %v715_v12  ;;  %700 = vmatpush3.bf16.msra.mxu1 %v715_v12 }
  0x42   :  { %668 = vmatprep.subr.bf16.mxu0 %v716_v13  ;;  %693 = vmatprep.subr.bf16.mxu1 %v716_v13 }
  0x45   :  { %669 = vmatpush3.bf16.msra.mxu0 %v716_v13  ;;  %701 = vmatpush3.bf16.msra.mxu1 %v716_v13 }
  0x48   :  { %671 = vmatmul.mubr.bf16.vlgmr.msra.gmra.mrb[0].mxu0 %v67_v22  ;;  %679 = vmatmul.mubr.bf16.vlgmr.msra.gmra.mrb[0].mxu1 %v71_v23 }
  0x49   :  { %674 = vmatprep.mubr.bf16.mxu0 %v68_v24  ;;  %682 = vmatprep.mubr.bf16.mxu1 %v72_v25 }
  0x50   :  { %675 = vmatmul.mubr.bf16.gmra.mrb[4].mxu0 %v69_v30  ;;  %683 = vmatmul.mubr.bf16.gmra.mrb[4].mxu1 %v73_v31 }
 0x11b   :  { %v672_v33 = vpop.f32.mrb[0].mxu0  ;;  %v680_v34 = vpop.f32.mrb[0].mxu1 }
 0x11c   :  { %v188_v35 = vadd.f32 %v672_v33, %v611_v32  ;;  %v220_v36 = vadd.f32 %v680_v34, %v611_v32  ;;  %v179_v37 = vpop.f32.mrb[1].mxu0  ;;  %v211_v38 = vpop.f32.mrb[1].mxu1 }
 0x11d   :  { %v673_v39 = vpop.f32.mrb[2].mxu0  ;;  %v681_v40 = vpop.f32.mrb[2].mxu1  ;;  %v180_v43 = vadd.f32 %v611_v32, %v179_v37  ;;  %v212_v47 = vadd.f32 %v611_v32, %v211_v38 }
 0x11e   :  { %264 = vadd.xlane.f32.xlu0 %v220_v36  ;;  %v214_v41 = vpop.f32.mrb[3].mxu1  ;;  %248 = vadd.xlane.f32.xlu1 %v188_v35  ;;  %v182_v42 = vpop.f32.mrb[3].mxu0  ;;  %v191_v44 = vadd.f32 %v673_v39, %v611_v32  ;;  %v223_v48 = vadd.f32 %v681_v40, %v611_v32 }
 0x11f   :  { %v215_v55 = vadd.f32 %v611_v32, %v214_v41  ;;  %v183_v56 = vadd.f32 %v611_v32, %v182_v42 }
 0x122   :  { %250 = vadd.xlane.f32.xlu1 %v191_v44  ;;  %244 = vadd.xlane.f32.xlu0 %v180_v43 }
 0x123   :  { %v676_v45 = vpop.f32.mrb[4].mxu0  ;;  %v684_v46 = vpop.f32.mrb[4].mxu1 }
 0x124   :  { %v195_v49 = vpop.f32.mrb[5].mxu0  ;;  %v227_v50 = vpop.f32.mrb[5].mxu1  ;;  %v204_v57 = vadd.f32 %v676_v45, %v611_v32  ;;  %v961_v63 = vadd.f32 %v684_v46, %v611_v32 }
 0x125   :  { %v677_v51 = vpop.f32.mrb[6].mxu0  ;;  %v685_v52 = vpop.f32.mrb[6].mxu1  ;;  %v196_v59 = vadd.f32 %v611_v32, %v195_v49  ;;  %v954_v61 = vadd.f32 %v611_v32, %v227_v50 }
 0x126   :  { %266 = vadd.xlane.f32.xlu1 %v223_v48  ;;  %260 = vadd.xlane.f32.xlu0 %v212_v47  ;;  %v198_v53 = vpop.f32.mrb[7].mxu0  ;;  %v230_v54 = vpop.f32.mrb[7].mxu1  ;;  %v207_v58 = vadd.f32 %v677_v51, %v611_v32  ;;  %v963_v0 = vadd.f32 %v685_v52, %v611_v32 }
 0x127   :  { %v952_v60 = vadd.f32 %v611_v32, %v198_v53  ;;  %v957_v62 = vadd.f32 %v611_v32, %v230_v54 }
 0x12a   :  { %262 = vadd.xlane.f32.xlu1 %v215_v55  ;;  %246 = vadd.xlane.f32.xlu0 %v183_v56 }
 0x12e   :  { %258 = vadd.xlane.f32.xlu1 %v207_v58  ;;  %256 = vadd.xlane.f32.xlu0 %v204_v57 }
 0x132   :  { %254 = vadd.xlane.f32.xlu1 %v952_v60  ;;  %252 = vadd.xlane.f32.xlu0 %v196_v59 }
 0x136   :  { %270 = vadd.xlane.f32.xlu1 %v957_v62  ;;  %268 = vadd.xlane.f32.xlu0 %v954_v61 }
 0x13a   :  { %274 = vadd.xlane.f32.xlu1 %v963_v0  ;;  %272 = vadd.xlane.f32.xlu0 %v961_v63 }
 0x1ab   :  { %v265_v1 = vpop.xlane.xlu0 %264  ;;  %v249_v2 = vpop.xlane.xlu1 %248 }
 0x1ac   :  { %v287_v3 = vmul.f32 0.0078125, %v265_v1  ;;  %v279_v4 = vmul.f32 0.0078125, %v249_v2 }
 0x1ae   :  { %v967_v5 = vsub.f32 %v188_v35, %v279_v4  ;;  %v969_v8 = vsub.f32 %v220_v36, %v287_v3 }
 0x1af   :  { %v251_v6 = vpop.xlane.xlu1 %250  ;;  %v245_v7 = vpop.xlane.xlu0 %244 }
 0x1b0   :  { %v280_v9 = vmul.f32 0.0078125, %v251_v6  ;;  %v277_v10 = vmul.f32 0.0078125, %v245_v7  ;;  %v311_v11 = vmul.f32 %v967_v5, %v967_v5  ;;  %v319_v19 = vmul.f32 %v969_v8, %v969_v8 }
 0x1b2   :  { %v973_v12 = vsub.f32 %v191_v44, %v280_v9  ;;  %329 = vadd.xlane.f32.xlu0 %v311_v11  ;;  %v975_v13 = vsub.f32 %v180_v43, %v277_v10 }
 0x1b3   :  { %v267_v14 = vpop.xlane.xlu1 %266  ;;  %v261_v15 = vpop.xlane.xlu0 %260 }
 0x1b4   :  { %v288_v16 = vmul.f32 0.0078125, %v267_v14  ;;  %v285_v17 = vmul.f32 0.0078125, %v261_v15  ;;  %v312_v18 = vmul.f32 %v973_v12, %v973_v12  ;;  %v309_v23 = vmul.f32 %v975_v13, %v975_v13 }
 0x1b6   :  { %v981_v20 = vsub.f32 %v223_v48, %v288_v16  ;;  %331 = vadd.xlane.f32.xlu1 %v312_v18  ;;  %345 = vadd.xlane.f32.xlu0 %v319_v19  ;;  %v985_v24 = vsub.f32 %v212_v47, %v285_v17 }
 0x1b7   :  { %v263_v21 = vpop.xlane.xlu1 %262  ;;  %v247_v22 = vpop.xlane.xlu0 %246 }
 0x1b8   :  { %v286_v25 = vmul.f32 0.0078125, %v263_v21  ;;  %v278_v26 = vmul.f32 0.0078125, %v247_v22  ;;  %v320_v27 = vmul.f32 %v981_v20, %v981_v20  ;;  %v317_v34 = vmul.f32 %v985_v24, %v985_v24 }
 0x1ba   :  { %v989_v28 = vsub.f32 %v183_v56, %v278_v26  ;;  %347 = vadd.xlane.f32.xlu1 %v320_v27  ;;  %325 = vadd.xlane.f32.xlu0 %v309_v23  ;;  %v991_v29 = vsub.f32 %v215_v55, %v286_v25  ;;  %v1039_v27 = vld [vmem:[%s1176_s3] ss:$0 sm:$0xff]  ;;  %s891_s3 = smov [#allocation7]  }
 0x1bb   :  { %v259_v30 = vpop.xlane.xlu1 %258  ;;  %v257_v31 = vpop.xlane.xlu0 %256 }
 0x1bc   :  { %v284_v32 = vmul.f32 0.0078125, %v259_v30  ;;  %v283_v33 = vmul.f32 0.0078125, %v257_v31  ;;  %v310_v35 = vmul.f32 %v989_v28, %v989_v28  ;;  %v318_v39 = vmul.f32 %v991_v29, %v991_v29 }
 0x1be   :  { %v997_v36 = vsub.f32 %v204_v57, %v283_v33  ;;  %341 = vadd.xlane.f32.xlu0 %v317_v34  ;;  %327 = vadd.xlane.f32.xlu1 %v310_v35  ;;  %v1001_v40 = vsub.f32 %v207_v58, %v284_v32  ;;  %v1045_v35 = vld [vmem:[%s1177_s4] ss:$0 sm:$0xff]  ;;  %s598_s4 = sshll.u32 %s891_s3, 4  ;;  %s599_s4 = int_to_ptr.vmem [resolvable:$true] %s598_s4 }
 0x1bf   :  { %v255_v37 = vpop.xlane.xlu1 %254  ;;  %v253_v38 = vpop.xlane.xlu0 %252  ;;  %s857_s24 = scalar_lea.vmem %s599_s4, 2048  ;;  %p862_p3 = scmp.lt.s32.totalorder %s599_s4, %s599_s4 }
 0x1c0   :  { %v282_v41 = vmul.f32 0.0078125, %v255_v37  ;;  %v281_v42 = vmul.f32 0.0078125, %v253_v38  ;;  %v315_v43 = vmul.f32 %v997_v36, %v997_v36  ;;  %v316_v50 = vmul.f32 %v1001_v40, %v1001_v40  ;;  %p858_p2 = scmp.ne.s32.totalorder %s599_s4, %s857_s24  ;;  %p863_p4 = scmp.lt.s32.totalorder %s857_s24, %s857_s24 }
 0x1c2   :  { %v1005_v44 = vsub.f32 %v196_v59, %v281_v42  ;;  %343 = vadd.xlane.f32.xlu1 %v318_v39  ;;  %337 = vadd.xlane.f32.xlu0 %v315_v43  ;;  %v1008_v45 = vsub.f32 %v952_v60, %v282_v41  ;;  %p864_p5 = por %p863_p4, %p862_p3 }
 0x1c3   :  { %v271_v46 = vpop.xlane.xlu1 %270  ;;  %v269_v47 = vpop.xlane.xlu0 %268 }
 0x1c4   :  { %v290_v48 = vmul.f32 0.0078125, %v271_v46  ;;  %v289_v49 = vmul.f32 0.0078125, %v269_v47  ;;  %v313_v51 = vmul.f32 %v1005_v44, %v1005_v44  ;;  %v314_v55 = vmul.f32 %v1008_v45, %v1008_v45  ;;  %p865_p6 = pnand %p864_p5, %p858_p2 }
 0x1c6   :  { %v1015_v52 = vsub.f32 %v954_v61, %v289_v49  ;;  %339 = vadd.xlane.f32.xlu1 %v316_v50  ;;  %333 = vadd.xlane.f32.xlu0 %v313_v51  ;;  %v1020_v56 = vsub.f32 %v957_v62, %v290_v48 }
 0x1c7   :  { %v275_v53 = vpop.xlane.xlu1 %274  ;;  %v273_v54 = vpop.xlane.xlu0 %272 }
 0x1c8   :  { %v292_v57 = vmul.f32 0.0078125, %v275_v53  ;;  %v291_v58 = vmul.f32 0.0078125, %v273_v54  ;;  %v321_v59 = vmul.f32 %v1015_v52, %v1015_v52  ;;  %v322_v1 = vmul.f32 %v1020_v56, %v1020_v56 }
 0x1ca   :  { %v1025_v60 = vsub.f32 %v961_v63, %v291_v58  ;;  %335 = vadd.xlane.f32.xlu1 %v314_v55  ;;  %349 = vadd.xlane.f32.xlu0 %v321_v59  ;;  %v1028_v61 = vsub.f32 %v963_v0, %v292_v57 }
 0x1cc   :  { %v323_v62 = vmul.f32 %v1025_v60, %v1025_v60  ;;  %v324_v2 = vmul.f32 %v1028_v61, %v1028_v61 }
 0x1ce   :  { %351 = vadd.xlane.f32.xlu1 %v322_v1  ;;  %353 = vadd.xlane.f32.xlu0 %v323_v62 }
 0x1d2   :  { %355 = vadd.xlane.f32.xlu1 %v324_v2 }
 0x23f   :  { %v330_v3 = vpop.xlane.xlu0 %329 }
 0x240   :  { %v359_v63 = vmul.f32 0.0078125, %v330_v3 }
 0x242   :  { %v375_v4 = vadd.f32 1e-05, %v359_v63 }
 0x243   :  { %v332_v6 = vpop.xlane.xlu1 %331  ;;  %v346_v7 = vpop.xlane.xlu0 %345 }
 0x244   :  { %717 = vrsqrt.f32 %v375_v4  ;;  %v360_v0 = vmul.f32 0.0078125, %v332_v6  ;;  %v367_v9 = vmul.f32 0.0078125, %v346_v7 }
 0x246   :  { %v376_v10 = vadd.f32 1e-05, %v360_v0  ;;  %v383_v11 = vadd.f32 1e-05, %v367_v9 }
 0x247   :  { %v348_v14 = vpop.xlane.xlu1 %347  ;;  %v326_v15 = vpop.xlane.xlu0 %325 }
 0x248   :  { %719 = vrsqrt.f32 %v376_v10  ;;  %v368_v16 = vmul.f32 0.0078125, %v348_v14  ;;  %v357_v17 = vmul.f32 0.0078125, %v326_v15 }
 0x249   :  { %721 = vrsqrt.f32 %v383_v11 }
 0x24a   :  { %v384_v18 = vadd.f32 1e-05, %v368_v16  ;;  %v373_v19 = vadd.f32 1e-05, %v357_v17 }
 0x24b   :  { %v328_v21 = vpop.xlane.xlu1 %327  ;;  %v342_v22 = vpop.xlane.xlu0 %341 }
 0x24c   :  { %723 = vrsqrt.f32 %v384_v18  ;;  %v358_v23 = vmul.f32 0.0078125, %v328_v21  ;;  %v365_v25 = vmul.f32 0.0078125, %v342_v22 }
 0x24d   :  { %725 = vrsqrt.f32 %v373_v19 }
 0x24e   :  { %v718_v26 = vpop.eup %717  ;;  %v374_v30 = vadd.f32 1e-05, %v358_v23  ;;  %v381_v31 = vadd.f32 1e-05, %v365_v25 }
 0x24f   :  { %v407_v32 = vmul.f32 %v718_v26, %v967_v5  ;;  %v344_v33 = vpop.xlane.xlu1 %343  ;;  %v338_v34 = vpop.xlane.xlu0 %337 }
 0x250   :  { %727 = vrsqrt.f32 %v374_v30  ;;  %v366_v37 = vmul.f32 0.0078125, %v344_v33  ;;  %v363_v38 = vmul.f32 0.0078125, %v338_v34 }
 0x251   :  { %v429_v39 = vmul.f32 %v1039_v27, %v407_v32  ;;  %729 = vrsqrt.f32 %v381_v31 }
 0x252   :  { %v720_v41 = vpop.eup %719  ;;  %v382_v42 = vadd.f32 1e-05, %v366_v37  ;;  %v379_v43 = vadd.f32 1e-05, %v363_v38 }
 0x253   :  { %v722_v46 = vpop.eup %721  ;;  %v1049_v47 = vadd.f32 %v1045_v35, %v429_v39  ;;  %v408_v5 = vmul.f32 %v720_v41, %v973_v12  ;;  %v340_v48 = vpop.xlane.xlu1 %339 }
 0x254   :  { %v334_v49 = vpop.xlane.xlu0 %333  ;;  %v415_v50 = vmul.f32 %v722_v46, %v969_v8  ;;  %731 = vrsqrt.f32 %v382_v42  ;;  %v364_v51 = vmul.f32 0.0078125, %v340_v48 }
 0x255   :  { %v361_v53 = vmul.f32 0.0078125, %v334_v49  ;;  %v624_v54 = vmul.f32 -1.442695, %v1049_v47  ;;  %v430_v55 = vmul.f32 %v1039_v27, %v408_v5  ;;  %733 = vrsqrt.f32 %v379_v43 }
 0x256   :  { %v724_v57 = vpop.eup %723  ;;  %v437_v58 = vmul.f32 %v1039_v27, %v415_v50  ;;  %v380_v59 = vadd.f32 1e-05, %v364_v51 }
 0x257   :  { %v377_v1 = vadd.f32 1e-05, %v361_v53  ;;  %v726_v62 = vpop.eup %725  ;;  %735 = vpow2.f32 %v624_v54  ;;  %v1057_v12 = vadd.f32 %v1045_v35, %v430_v55  ;;  %v416_v8 = vmul.f32 %v724_v57, %v981_v20  ;;  %v336_v2 = vpop.xlane.xlu1 %335 }
 0x258   :  { %v350_v3 = vpop.xlane.xlu0 %349  ;;  %v1061_v63 = vadd.f32 %v1045_v35, %v437_v58  ;;  %v405_v4 = vmul.f32 %v726_v62, %v975_v13  ;;  %737 = vrsqrt.f32 %v380_v59  ;;  %v362_v6 = vmul.f32 0.0078125, %v336_v2 }
 0x259   :  { %v625_v7 = vmul.f32 -1.442695, %v1057_v12  ;;  %v438_v0 = vmul.f32 %v1039_v27, %v416_v8  ;;  %739 = vrsqrt.f32 %v377_v1  ;;  %v369_v9 = vmul.f32 0.0078125, %v350_v3 }
 0x25a   :  { %v728_v10 = vpop.eup %727  ;;  %v632_v11 = vmul.f32 -1.442695, %v1061_v63  ;;  %v427_v20 = vmul.f32 %v1039_v27, %v405_v4  ;;  %v378_v14 = vadd.f32 1e-05, %v362_v6 }
 0x25b   :  { %v730_v15 = vpop.eup %729  ;;  %741 = vpow2.f32 %v625_v7  ;;  %v1069_v16 = vadd.f32 %v1045_v35, %v438_v0  ;;  %v406_v13 = vmul.f32 %v728_v10, %v989_v28  ;;  %v385_v17 = vadd.f32 1e-05, %v369_v9  ;;  %v352_v18 = vpop.xlane.xlu1 %351 }
 0x25c   :  { %v354_v19 = vpop.xlane.xlu0 %353  ;;  %743 = vpow2.f32 %v632_v11  ;;  %v1073_v21 = vadd.f32 %v1045_v35, %v427_v20  ;;  %v413_v22 = vmul.f32 %v730_v15, %v985_v24  ;;  %v370_v23 = vmul.f32 0.0078125, %v352_v18 }
 0x25d   :  { %v633_v25 = vmul.f32 -1.442695, %v1069_v16  ;;  %v428_v26 = vmul.f32 %v1039_v27, %v406_v13  ;;  %745 = vrsqrt.f32 %v378_v14  ;;  %v371_v30 = vmul.f32 0.0078125, %v354_v19 }
 0x25e   :  { %v732_v31 = vpop.eup %731  ;;  %v622_v32 = vmul.f32 -1.442695, %v1073_v21  ;;  %v435_v28 = vmul.f32 %v1039_v27, %v413_v22  ;;  %747 = vrsqrt.f32 %v385_v17  ;;  %v386_v33 = vadd.f32 1e-05, %v370_v23 }
 0x25f   :  { %v734_v34 = vpop.eup %733  ;;  %749 = vpow2.f32 %v633_v25  ;;  %v1081_v37 = vadd.f32 %v1045_v35, %v428_v26  ;;  %v414_v24 = vmul.f32 %v732_v31, %v991_v29  ;;  %v387_v38 = vadd.f32 1e-05, %v371_v30  ;;  %v356_v39 = vpop.xlane.xlu1 %355 }
 0x260   :  { %751 = vpow2.f32 %v622_v32  ;;  %v1085_v41 = vadd.f32 %v1045_v35, %v435_v28  ;;  %v411_v42 = vmul.f32 %v734_v34, %v997_v36  ;;  %v372_v43 = vmul.f32 0.0078125, %v356_v39 }
 0x261   :  { %v736_v46 = vpop.eup %735  ;;  %v623_v5 = vmul.f32 -1.442695, %v1081_v37  ;;  %v436_v48 = vmul.f32 %v1039_v27, %v414_v24  ;;  %753 = vrsqrt.f32 %v386_v33 }
 0x262   :  { %v738_v49 = vpop.eup %737  ;;  %v515_v50 = vadd.f32 1.0, %v736_v46  ;;  %v630_v51 = vmul.f32 -1.442695, %v1085_v41  ;;  %v433_v29 = vmul.f32 %v1039_v27, %v411_v42  ;;  %755 = vrsqrt.f32 %v387_v38 }
 0x263   :  { %v740_v53 = vpop.eup %739  ;;  %757 = vpow2.f32 %v623_v5  ;;  %v1093_v54 = vadd.f32 %v1045_v35, %v436_v48  ;;  %v412_v36 = vmul.f32 %v738_v49, %v1001_v40  ;;  %v388_v55 = vadd.f32 1e-05, %v372_v43 }
 0x264   :  { %759 = vrcp.f32 %v515_v50  ;;  %v1097_v57 = vadd.f32 %v1045_v35, %v433_v29  ;;  %v409_v58 = vmul.f32 %v740_v53, %v1005_v44 }
 0x265   :  { %v742_v59 = vpop.eup %741  ;;  %761 = vpow2.f32 %v630_v51  ;;  %v631_v1 = vmul.f32 -1.442695, %v1093_v54  ;;  %v434_v62 = vmul.f32 %v1039_v27, %v412_v36 }
 0x266   :  { %v744_v8 = vpop.eup %743  ;;  %v516_v2 = vadd.f32 1.0, %v742_v59  ;;  %v628_v3 = vmul.f32 -1.442695, %v1097_v57  ;;  %v431_v4 = vmul.f32 %v1039_v27, %v409_v58  ;;  %763 = vrsqrt.f32 %v388_v55 }
 0x267   :  { %v746_v40 = vpop.eup %745  ;;  %v523_v6 = vadd.f32 1.0, %v744_v8  ;;  %765 = vpow2.f32 %v631_v1  ;;  %v1105_v7 = vadd.f32 %v1045_v35, %v434_v62 }
 0x268   :  { %v748_v44 = vpop.eup %747  ;;  %767 = vrcp.f32 %v516_v2  ;;  %v1108_v0 = vadd.f32 %v1045_v35, %v431_v4  ;;  %v410_v9 = vmul.f32 %v746_v40, %v1008_v45 }
 0x269   :  { %v750_v10 = vpop.eup %749  ;;  %769 = vrcp.f32 %v523_v6  ;;  %v629_v11 = vmul.f32 -1.442695, %v1105_v7  ;;  %v417_v20 = vmul.f32 %v748_v44, %v1015_v52 }
 0x26a   :  { %v752_v14 = vpop.eup %751  ;;  %v524_v15 = vadd.f32 1.0, %v750_v10  ;;  %771 = vpow2.f32 %v628_v3  ;;  %v626_v13 = vmul.f32 -1.442695, %v1108_v0  ;;  %v432_v17 = vmul.f32 %v1039_v27, %v410_v9 }
 0x26b   :  { %v754_v18 = vpop.eup %753  ;;  %v513_v19 = vadd.f32 1.0, %v752_v14  ;;  %773 = vpow2.f32 %v629_v11  ;;  %v439_v22 = vmul.f32 %v1039_v27, %v417_v20 }
 0x26c   :  { %v756_v23 = vpop.eup %755  ;;  %775 = vrcp.f32 %v524_v15  ;;  %v1117_v45 = vadd.f32 %v1045_v35, %v432_v17  ;;  %v418_v25 = vmul.f32 %v754_v18, %v1020_v56 }
 0x26d   :  { %v758_v52 = vpop.eup %757  ;;  %777 = vrcp.f32 %v513_v19  ;;  %v1121_v26 = vadd.f32 %v1045_v35, %v439_v22  ;;  %v419_v30 = vmul.f32 %v756_v23, %v1025_v60 }
 0x26e   :  { %v760_v31 = vpop.eup %759  ;;  %v514_v32 = vadd.f32 1.0, %v758_v52  ;;  %779 = vpow2.f32 %v626_v13  ;;  %v627_v28 = vmul.f32 -1.442695, %v1117_v45  ;;  %v440_v33 = vmul.f32 %v1039_v27, %v418_v25 }
 0x26f   :  { %v762_v34 = vpop.eup %761  ;;  %v563_v24 = vmul.f32 %v760_v31, %v1049_v47  ;;  %v634_v38 = vmul.f32 -1.442695, %v1121_v26  ;;  %v441_v56 = vmul.f32 %v1039_v27, %v419_v30 }
 0x270   :  { %v764_v39 = vpop.eup %763  ;;  %781 = vrcp.f32 %v514_v32  ;;  %v521_v42 = vadd.f32 1.0, %v762_v34  ;;  %v1130_v43 = vadd.f32 %v1045_v35, %v440_v33 }
 0x271   :  { %v766_v60 = vpop.eup %765  ;;  %579 = vst [vmem:[#allocation7 + $0x10] sm:$0xff] %v563_v24  ;;  %783 = vpow2.f32 %v627_v28  ;;  %v1133_v46 = vadd.f32 %v1045_v35, %v441_v56  ;;  %v420_v5 = vmul.f32 %v764_v39, %v1028_v61 }
 0x272   :  { %v768_v48 = vpop.eup %767  ;;  %785 = vrcp.f32 %v521_v42  ;;  %v522_v47 = vadd.f32 1.0, %v766_v60  ;;  %v635_v49 = vmul.f32 -1.442695, %v1130_v43 }
 0x273   :  { %v770_v50 = vpop.eup %769  ;;  %v564_v51 = vmul.f32 %v768_v48, %v1057_v12  ;;  %787 = vpow2.f32 %v634_v38  ;;  %v636_v29 = vmul.f32 -1.442695, %v1133_v46  ;;  %v442_v53 = vmul.f32 %v1039_v27, %v420_v5 }
 0x274   :  { %v772_v36 = vpop.eup %771  ;;  %v571_v55 = vmul.f32 %v770_v50, %v1061_v63  ;;  %789 = vrcp.f32 %v522_v47 }
 0x275   :  { %v774_v58 = vpop.eup %773  ;;  %580 = vst [vmem:[#allocation7 + $0x18] sm:$0xff] %v564_v51  ;;  %v519_v61 = vadd.f32 1.0, %v772_v36  ;;  %791 = vpow2.f32 %v635_v49  ;;  %v1142_v59 = vadd.f32 %v1045_v35, %v442_v53 }
 0x276   :  { %v776_v1 = vpop.eup %775  ;;  %587 = vst [vmem:[#allocation7 + $0x50] sm:$0xff] %v571_v55  ;;  %v520_v62 = vadd.f32 1.0, %v774_v58  ;;  %793 = vpow2.f32 %v636_v29 }
 0x277   :  { %v778_v12 = vpop.eup %777  ;;  %v572_v8 = vmul.f32 %v776_v1, %v1069_v16  ;;  %795 = vrcp.f32 %v519_v61  ;;  %v637_v27 = vmul.f32 -1.442695, %v1142_v59 }
 0x278   :  { %v780_v2 = vpop.eup %779  ;;  %v561_v63 = vmul.f32 %v778_v12, %v1073_v21  ;;  %797 = vrcp.f32 %v520_v62 }
 0x279   :  { %588 = vst [vmem:[#allocation7 + $0x58] sm:$0xff] %v572_v8  ;;  %v517_v3 = vadd.f32 1.0, %v780_v2  ;;  %799 = vpow2.f32 %v637_v27 }
 0x27a   :  { %v782_v4 = vpop.eup %781  ;;  %577 = vst [vmem:[#allocation7] sm:$0xff] %v561_v63 }
 0x27b   :  { %v784_v35 = vpop.eup %783  ;;  %v562_v40 = vmul.f32 %v782_v4, %v1081_v37  ;;  %801 = vrcp.f32 %v517_v3 }
 0x27c   :  { %v786_v6 = vpop.eup %785  ;;  %v518_v44 = vadd.f32 1.0, %v784_v35 }
 0x27d   :  { %v788_v9 = vpop.eup %787  ;;  %578 = vst [vmem:[#allocation7 + $0x8] sm:$0xff] %v562_v40  ;;  %v569_v16 = vmul.f32 %v786_v6, %v1085_v41 }
 0x27e   :  { %v790_v10 = vpop.eup %789  ;;  %803 = vrcp.f32 %v518_v44  ;;  %v525_v11 = vadd.f32 1.0, %v788_v9 }
 0x27f   :  { %v792_v21 = vpop.eup %791  ;;  %585 = vst [vmem:[#allocation7 + $0x40] sm:$0xff] %v569_v16  ;;  %v570_v20 = vmul.f32 %v790_v10, %v1093_v54 }
 0x280   :  { %v794_v14 = vpop.eup %793  ;;  %805 = vrcp.f32 %v525_v11  ;;  %v526_v15 = vadd.f32 1.0, %v792_v21 }
 0x281   :  { %v796_v13 = vpop.eup %795  ;;  %586 = vst [vmem:[#allocation7 + $0x48] sm:$0xff] %v570_v20  ;;  %v527_v37 = vadd.f32 1.0, %v794_v14 }
 0x282   :  { %v798_v17 = vpop.eup %797  ;;  %v567_v18 = vmul.f32 %v796_v13, %v1097_v57  ;;  %807 = vrcp.f32 %v526_v15 }
 0x283   :  { %v800_v19 = vpop.eup %799  ;;  %v568_v41 = vmul.f32 %v798_v17, %v1105_v7  ;;  %809 = vrcp.f32 %v527_v37 }
 0x284   :  { %583 = vst [vmem:[#allocation7 + $0x30] sm:$0xff] %v567_v18  ;;  %v528_v22 = vadd.f32 1.0, %v800_v19 }
 0x285   :  { %v802_v23 = vpop.eup %801  ;;  %584 = vst [vmem:[#allocation7 + $0x38] sm:$0xff] %v568_v41 }
 0x286   :  { %v565_v54 = vmul.f32 %v802_v23, %v1108_v0  ;;  %811 = vrcp.f32 %v528_v22 }
 0x288   :  { %v804_v25 = vpop.eup %803  ;;  %581 = vst [vmem:[#allocation7 + $0x20] sm:$0xff] %v565_v54 }
 0x289   :  { %v566_v52 = vmul.f32 %v804_v25, %v1117_v45 }
 0x28a   :  { %v806_v30 = vpop.eup %805 }
 0x28b   :  { %582 = vst [vmem:[#allocation7 + $0x28] sm:$0xff] %v566_v52  ;;  %v573_v57 = vmul.f32 %v806_v30, %v1121_v26 }
 0x28c   :  { %v808_v31 = vpop.eup %807 }
 0x28d   :  { %v810_v32 = vpop.eup %809  ;;  %589 = vst [vmem:[#allocation7 + $0x60] sm:$0xff] %v573_v57  ;;  %v574_v7 = vmul.f32 %v808_v31, %v1130_v43 }
 0x28e   :  { %v575_v28 = vmul.f32 %v810_v32, %v1133_v46 }
 0x28f   :  { %590 = vst [vmem:[#allocation7 + $0x68] sm:$0xff] %v574_v7 }
 0x290   :  { %v812_v0 = vpop.eup %811  ;;  %591 = vst [vmem:[#allocation7 + $0x70] sm:$0xff] %v575_v28 }
 0x291   :  { %v576_v33 = vmul.f32 %v812_v0, %v1142_v59 }
 0x293   :  { %592 = vst [vmem:[#allocation7 + $0x78] sm:$0xff] %v576_v33 }
 0x294   :  { %868 = shalt.err (!%p865_p6)
}
 0x295   :  { %s869_s27 = scalar_lea.hbm %s1178_s5, 2048 }
 0x296   :  { %p870_p7 = scmp.ne.s32.totalorder %s1178_s5, %s869_s27  ;;  %p873_p8 = scmp.lt.u32.totalorder %s869_s27, %s1178_s5 }
 0x298   :  { %p875_p9 = pnand %p873_p8, %p870_p7 }
 0x29a   :  { %878 = shalt.err (!%p875_p9)
}
 0x29b   :  { %604 = dma.vmem_to_hbm [thread:$0]  %s599_s4, 2048, %s1178_s5, [#allocation4], %s886_s28, %s886_s28, %s887_s29  }
 0x29c   :  { %883 = dma.done.wait [#allocation4], 2048  }
 0x29d   :  { %884 = vsyncadd [#allocation4], 4294965248 }
 0x29e   :  { %608 = vsyncpa [#allocation3], 1 }
 0x29f   :  { %609 = vsyncpa [#allocation6], 1 }
 0x2a0   :  { %610 = vsyncpa [#allocation4], 1 }

</bundles_post_ra>
